<compile_context>
chip_gen: v5e
topology: v5e:2x2
jax: 0.10.0
libtpu: 0.0.40
codegen_flags: <defaults>
</compile_context>

<pallas_src>
import functools
import math

import numpy as np
import jax
import jax.numpy as jnp
from jax.experimental import pallas as pl
from jax.experimental.pallas import tpu as pltpu

F32 = jnp.float32
BF16 = jnp.bfloat16

TM = 128   # M tile of the matmul kernel
TN = 256   # N tile (matches 2x256^2 MXU on v6e/v7x; still fine on v5e)
TK = 256   # K tile


def _round_up(x, m):
    return ((x + m - 1) // m) * m


# ----------------------------------------------------------------------------------
# Activation helpers (used inside kernels)
# ----------------------------------------------------------------------------------
def _apply_act(x, act):
    if act == "silu":
        return x * (1.0 / (1.0 + jnp.exp(-x)))
    if act == "gelu":
        # TODO(synk): PyTorch F.gelu defaults to exact erf-GELU; tanh approximation
        # is used here (erf lowering on Mosaic is not guaranteed).
        c = math.sqrt(2.0 / math.pi)
        return 0.5 * x * (1.0 + jnp.tanh(c * (x + 0.044715 * x * x * x)))
    return x


# ----------------------------------------------------------------------------------
# Tiled matmul kernel: bf16 inputs, f32 accumulation, fused bias/act/residual
# ----------------------------------------------------------------------------------
def _matmul_kernel(x_ref, w_ref, b_ref, o_ref, acc_ref, *, act):
    k = pl.program_id(2)

    @pl.when(k == 0)
    def _():
        acc_ref[...] = jnp.zeros_like(acc_ref)

    acc_ref[...] += jnp.dot(x_ref[...], w_ref[...], preferred_element_type=jnp.float32)

    @pl.when(k == pl.num_programs(2) - 1)
    def _():
        r = acc_ref[...] + b_ref[...]
        o_ref[...] = _apply_act(r, act)


def _matmul_res_kernel(x_ref, w_ref, b_ref, r_ref, o_ref, acc_ref, *, act):
    k = pl.program_id(2)

    @pl.when(k == 0)
    def _():
        acc_ref[...] = jnp.zeros_like(acc_ref)

    acc_ref[...] += jnp.dot(x_ref[...], w_ref[...], preferred_element_type=jnp.float32)

    @pl.when(k == pl.num_programs(2) - 1)
    def _():
        r = _apply_act(acc_ref[...] + b_ref[...], act)
        o_ref[...] = r + r_ref[...]           # fused residual add (epilogue)


@functools.cache
def _matmul_call(Mp, Kp, Np, act, has_res):
    tm = min(TM, Mp)
    grid = (Mp // tm, Np // TN, Kp // TK)
    in_specs = [
        pl.BlockSpec((tm, TK), lambda i, j, k: (i, k)),
        pl.BlockSpec((TK, TN), lambda i, j, k: (k, j)),
        pl.BlockSpec((1, TN), lambda i, j, k: (0, j)),
    ]
    if has_res:
        in_specs.append(pl.BlockSpec((tm, TN), lambda i, j, k: (i, j)))
    kernel = functools.partial(
        _matmul_res_kernel if has_res else _matmul_kernel, act=act)
    cost = pl.CostEstimate(
        flops=2 * Mp * Kp * Np,
        transcendentals=0,
        bytes_accessed=(Mp * Kp + Kp * Np) * 2 + Mp * Np * 4)
    fn = pl.pallas_call(
        kernel,
        out_shape=jax.ShapeDtypeStruct((Mp, Np), F32),
        grid_spec=pltpu.PrefetchScalarGridSpec(
            num_scalar_prefetch=0,
            grid=grid,
            in_specs=in_specs,
            out_specs=pl.BlockSpec((tm, TN), lambda i, j, k: (i, j)),
            scratch_shapes=[pltpu.VMEM((tm, TN), F32)]),
        compiler_params=pltpu.CompilerParams(
            dimension_semantics=("parallel", "parallel", "arbitrary"),
            vmem_limit_bytes=48 * 1024 * 1024),
        cost_estimate=cost,
    )
    return jax.jit(fn)


def linear(x, w, b=None, act=None, residual=None):
    """(M,K) @ (K,N) + b, optional fused activation and residual add."""
    M, K = x.shape
    K2, N = w.shape
    assert K == K2
    Mp = _round_up(M, TM) if M > TM else _round_up(M, 8)
    Kp = _round_up(K, TK)
    Np = _round_up(N, TN)
    xp = x.astype(BF16)
    if (Mp, Kp) != (M, K):
        xp = jnp.pad(xp, ((0, Mp - M), (0, Kp - K)))
    wp = w.astype(BF16)
    if (Kp, Np) != (K, N):
        wp = jnp.pad(wp, ((0, Kp - K), (0, Np - N)))
    bb = b if b is not None else jnp.zeros((N,), F32)
    bp = (bb if Np == N else jnp.pad(bb, (0, Np - N))).reshape(1, Np).astype(F32)
    if residual is not None:
        rp = residual.astype(F32)
        if (Mp, Np) != residual.shape:
            rp = jnp.pad(rp, ((0, Mp - M), (0, Np - N)))
        out = _matmul_call(Mp, Kp, Np, act, True)(xp, wp, bp, rp)
    else:
        out = _matmul_call(Mp, Kp, Np, act, False)(xp, wp, bp)
    return out[:M, :N]


# ----------------------------------------------------------------------------------
# GroupNorm: channels-last, two gridded passes (stats accumulation + affine/SiLU)
# ----------------------------------------------------------------------------------
def _gn_stats_kernel(x_ref, sum_ref, sq_ref):
    t = pl.program_id(1)

    @pl.when(t == 0)
    def _():
        sum_ref[...] = jnp.zeros_like(sum_ref)
        sq_ref[...] = jnp.zeros_like(sq_ref)

    x = x_ref[...]                                   # (1, TH, C) f32
    sum_ref[...] += jnp.sum(x, axis=1, keepdims=True)
    sq_ref[...] += jnp.sum(x * x, axis=1, keepdims=True)


def _gn_apply_kernel(x_ref, sc_ref, sh_ref, o_ref, *, silu_act):
    y = x_ref[...] * sc_ref[...] + sh_ref[...]
    if silu_act:
        y = y * (1.0 / (1.0 + jnp.exp(-y)))
    o_ref[...] = y


@functools.cache
def _gn_stats_call(N, HW, C, th):
    fn = pl.pallas_call(
        _gn_stats_kernel,
        out_shape=(jax.ShapeDtypeStruct((N, 1, C), F32),
                   jax.ShapeDtypeStruct((N, 1, C), F32)),
        grid_spec=pltpu.PrefetchScalarGridSpec(
            num_scalar_prefetch=0,
            grid=(N, HW // th),
            in_specs=[pl.BlockSpec((1, th, C), lambda n, t: (n, t, 0))],
            out_specs=(pl.BlockSpec((1, 1, C), lambda n, t: (n, 0, 0)),
                       pl.BlockSpec((1, 1, C), lambda n, t: (n, 0, 0)))),
        compiler_params=pltpu.CompilerParams(
            dimension_semantics=("parallel", "arbitrary")),
    )
    return jax.jit(fn)


@functools.cache
def _gn_apply_call(N, HW, C, th, silu_act):
    fn = pl.pallas_call(
        functools.partial(_gn_apply_kernel, silu_act=silu_act),
        out_shape=jax.ShapeDtypeStruct((N, HW, C), F32),
        grid_spec=pltpu.PrefetchScalarGridSpec(
            num_scalar_prefetch=0,
            grid=(N, HW // th),
            in_specs=[pl.BlockSpec((1, th, C), lambda n, t: (n, t, 0)),
                      pl.BlockSpec((1, 1, C), lambda n, t: (n, 0, 0)),
                      pl.BlockSpec((1, 1, C), lambda n, t: (n, 0, 0))],
            out_specs=pl.BlockSpec((1, th, C), lambda n, t: (n, t, 0))),
        compiler_params=pltpu.CompilerParams(
            dimension_semantics=("parallel", "parallel")),
    )
    return jax.jit(fn)


def group_norm(x_nhwc, gamma, beta, *, num_groups=32, eps=1e-5, silu_act=False):
    N, H, W, C = x_nhwc.shape
    HW = H * W
    G = num_groups
    Cg = C // G
    x = x_nhwc.reshape(N, HW, C)                     # channels last, no transpose
    th = 256 if (HW > 256 and HW % 256 == 0) else HW
    s, sq = _gn_stats_call(N, HW, C, th)(x)
    # tiny (N, C) -> (N, G) reduction: plain-JAX glue (negligible vs. the big passes)
    cnt = float(HW * Cg)
    s = s.reshape(N, G, Cg).sum(-1)
    sq = sq.reshape(N, G, Cg).sum(-1)
    mean = s / cnt
    var = sq / cnt - mean * mean
    rstd = jax.lax.rsqrt(var + eps)                  # (N, G), f32 stats
    rstd = jnp.repeat(rstd, Cg, axis=1)              # (N, C)
    mean = jnp.repeat(mean, Cg, axis=1)
    scale = gamma.reshape(1, C) * rstd
    shift = beta.reshape(1, C) - mean * scale
    y = _gn_apply_call(N, HW, C, th, bool(silu_act))(
        x, scale.reshape(N, 1, C), shift.reshape(N, 1, C))
    return y.reshape(N, H, W, C)


# ----------------------------------------------------------------------------------
# LayerNorm (row-tiled)
# ----------------------------------------------------------------------------------
def _layernorm_kernel(x_ref, g_ref, b_ref, o_ref, *, eps):
    x = x_ref[...]
    mean = jnp.mean(x, axis=-1, keepdims=True)
    var = jnp.mean((x - mean) ** 2, axis=-1, keepdims=True)
    o_ref[...] = (x - mean) * jax.lax.rsqrt(var + eps) * g_ref[...] + b_ref[...]


@functools.cache
def _layernorm_call(R, C, tr, eps):
    fn = pl.pallas_call(
        functools.partial(_layernorm_kernel, eps=eps),
        out_shape=jax.ShapeDtypeStruct((R, C), F32),
        grid_spec=pltpu.PrefetchScalarGridSpec(
            num_scalar_prefetch=0,
            grid=(R // tr,),
            in_specs=[pl.BlockSpec((tr, C), lambda r: (r, 0)),
                      pl.BlockSpec((1, C), lambda r: (0, 0)),
                      pl.BlockSpec((1, C), lambda r: (0, 0))],
            out_specs=pl.BlockSpec((tr, C), lambda r: (r, 0))),
        compiler_params=pltpu.CompilerParams(dimension_semantics=("parallel",)),
    )
    return jax.jit(fn)


def layer_norm(x2d, gamma, beta, eps=1e-5):
    R, C = x2d.shape
    tr = 256 if (R > 256 and R % 256 == 0) else R
    return _layernorm_call(R, C, tr, float(eps))(
        x2d, gamma.reshape(1, C), beta.reshape(1, C))


# ----------------------------------------------------------------------------------
# Flash-style attention (online softmax, scale folded into q, bf16 matmuls)
# ----------------------------------------------------------------------------------
def _flash_kernel(q_ref, k_ref, v_ref, o_ref, m_sc, l_sc, acc_sc):
    kv = pl.program_id(1)

    @pl.when(kv == 0)
    def _():
        m_sc[...] = jnp.full_like(m_sc, -jnp.inf)
        l_sc[...] = jnp.zeros_like(l_sc)
        acc_sc[...] = jnp.zeros_like(acc_sc)

    s = jnp.einsum("bqd,bkd->bqk", q_ref[...], k_ref[...],
                   preferred_element_type=jnp.float32)
    m_new = jnp.maximum(m_sc[...], s.max(-1, keepdims=True))
    alpha = jnp.exp(m_sc[...] - m_new)
    p = jnp.exp(s - m_new)
    l_sc[...] = alpha * l_sc[...] + p.sum(-1, keepdims=True)
    acc_sc[...] = alpha * acc_sc[...] + jnp.einsum(
        "bqk,bkd->bqd", p.astype(v_ref.dtype), v_ref[...],
        preferred_element_type=jnp.float32)
    m_sc[...] = m_new

    @pl.when(kv == pl.num_programs(1) - 1)
    def _():
        # NOTE: pl.reciprocal(l, approx=True) would push this to the EUP slot;
        # plain divide is kept for interpret-mode compatibility (epilogue-only cost).
        o_ref[...] = (acc_sc[...] * (1.0 / l_sc[...])).astype(o_ref.dtype)


@functools.cache
def _flash_call(B, Sq, Sk, D, tq, tk):
    cost = pl.CostEstimate(
        flops=4 * B * Sq * Sk * D,
        transcendentals=B * Sq * Sk,
        bytes_accessed=(B * Sq * D + 2 * B * Sk * D) * 2 + B * Sq * D * 4)
    fn = pl.pallas_call(
        _flash_kernel,
        out_shape=jax.ShapeDtypeStruct((B, Sq, D), F32),
        grid_spec=pltpu.PrefetchScalarGridSpec(
            num_scalar_prefetch=0,
            grid=(Sq // tq, Sk // tk),
            in_specs=[pl.BlockSpec((B, tq, D), lambda qi, ki: (0, qi, 0)),
                      pl.BlockSpec((B, tk, D), lambda qi, ki: (0, ki, 0)),
                      pl.BlockSpec((B, tk, D), lambda qi, ki: (0, ki, 0))],
            out_specs=pl.BlockSpec((B, tq, D), lambda qi, ki: (0, qi, 0)),
            scratch_shapes=[pltpu.VMEM((B, tq, 1), F32),
                            pltpu.VMEM((B, tq, 1), F32),
                            pltpu.VMEM((B, tq, D), F32)]),
        compiler_params=pltpu.CompilerParams(
            dimension_semantics=("parallel", "arbitrary"),
            vmem_limit_bytes=48 * 1024 * 1024),
        cost_estimate=cost,
    )
    return jax.jit(fn)


def sdpa(q, k, v):
    B, Sq, D = q.shape
    Sk = k.shape[1]
    scale = 1.0 / math.sqrt(D)
    q = (q * scale).astype(BF16)                    # fold 1/sqrt(D) into q
    k = k.astype(BF16)
    v = v.astype(BF16)
    tq = 128 if Sq % 128 == 0 else Sq
    tk = 128 if Sk % 128 == 0 else Sk
    return _flash_call(B, Sq, Sk, D, tq, tk)(q, k, v)


# ----------------------------------------------------------------------------------
# SiLU / GeGLU (row-tiled elementwise)
# ----------------------------------------------------------------------------------
def _silu_kernel(x_ref, o_ref):
    x = x_ref[...]
    o_ref[...] = x * (1.0 / (1.0 + jnp.exp(-x)))


@functools.cache
def _silu_call(R, C, tr):
    fn = pl.pallas_call(
        _silu_kernel,
        out_shape=jax.ShapeDtypeStruct((R, C), F32),
        grid_spec=pltpu.PrefetchScalarGridSpec(
            num_scalar_prefetch=0,
            grid=(R // tr,),
            in_specs=[pl.BlockSpec((tr, C), lambda r: (r, 0))],
            out_specs=pl.BlockSpec((tr, C), lambda r: (r, 0))),
        compiler_params=pltpu.CompilerParams(dimension_semantics=("parallel",)),
    )
    return jax.jit(fn)


def silu(x2d):
    R, C = x2d.shape
    tr = 256 if (R > 256 and R % 256 == 0) else R
    return _silu_call(R, C, tr)(x2d)


def _geglu_kernel(a_ref, g_ref, o_ref):
    o_ref[...] = a_ref[...] * _apply_act(g_ref[...], "gelu")


@functools.cache
def _geglu_call(R, C, tr):
    fn = pl.pallas_call(
        _geglu_kernel,
        out_shape=jax.ShapeDtypeStruct((R, C), F32),
        grid_spec=pltpu.PrefetchScalarGridSpec(
            num_scalar_prefetch=0,
            grid=(R // tr,),
            in_specs=[pl.BlockSpec((tr, C), lambda r: (r, 0)),
                      pl.BlockSpec((tr, C), lambda r: (r, 0))],
            out_specs=pl.BlockSpec((tr, C), lambda r: (r, 0))),
        compiler_params=pltpu.CompilerParams(dimension_semantics=("parallel",)),
    )
    return jax.jit(fn)


def geglu(a, gate):
    R, C = a.shape
    tr = 256 if (R > 256 and R % 256 == 0) else R
    return _geglu_call(R, C, tr)(a, gate)


# ----------------------------------------------------------------------------------
# Conv via im2col (glue) + Pallas matmul (bias/act/residual fused in epilogue)
# ----------------------------------------------------------------------------------
def conv2d(x, w, b, *, ksize, stride=1, pad=0, act=None, residual=None):
    N, H, W, C = x.shape
    if ksize == 1:
        res2d = residual.reshape(N * H * W, -1) if residual is not None else None
        out = linear(x.reshape(N * H * W, C), w, b, act=act, residual=res2d)
        return out.reshape(N, H, W, -1)
    xp = jnp.pad(x.astype(BF16), ((0, 0), (pad, pad), (pad, pad), (0, 0)))
    Ho = (H + 2 * pad - ksize) // stride + 1
    Wo = (W + 2 * pad - ksize) // stride + 1
    cols = []
    for dy in range(ksize):
        for dx in range(ksize):
            cols.append(xp[:, dy:dy + (Ho - 1) * stride + 1:stride,
                              dx:dx + (Wo - 1) * stride + 1:stride, :])
    patches = jnp.concatenate(cols, axis=-1).reshape(N * Ho * Wo, ksize * ksize * C)
    res2d = residual.reshape(N * Ho * Wo, -1) if residual is not None else None
    out = linear(patches, w, b, act=act, residual=res2d)
    return out.reshape(N, Ho, Wo, -1)


# ----------------------------------------------------------------------------------
# Deterministic parameter construction (numpy RNG: fast and deterministic)
# ----------------------------------------------------------------------------------
_RNG = np.random.default_rng(0)


def _init(shape, scale):
    return jnp.asarray(_RNG.standard_normal(shape, dtype=np.float32) * scale)


def make_linear(cin, cout, bias=True):
    return {"w": _init((cin, cout), 1.0 / math.sqrt(cin)),
            "b": jnp.zeros((cout,), F32) if bias else None}


def make_conv(cin, cout, k):
    return {"w": _init((k * k * cin, cout), 1.0 / math.sqrt(k * k * cin)),
            "b": jnp.zeros((cout,), F32)}


def make_norm(c):
    return {"g": jnp.ones((c,), F32), "b": jnp.zeros((c,), F32)}


def make_time_embedding(n_embd):
    return {"l1": make_linear(n_embd, 4 * n_embd),
            "l2": make_linear(4 * n_embd, 4 * n_embd)}


def make_res_block(cin, cout, n_time):
    p = {"gn1": make_norm(cin), "conv1": make_conv(cin, cout, 3),
         "lt": make_linear(n_time, cout),
         "gn2": make_norm(cout), "conv2": make_conv(cout, cout, 3)}
    if cin != cout:
        p["res"] = make_conv(cin, cout, 1)
    return p


def make_attn_block(n_head, n_embd, d_ctx):
    c = n_head * n_embd
    return {"n_head": n_head,
            "gn": make_norm(c), "conv_in": make_conv(c, c, 1),
            "ln1": make_norm(c),
            "sa_in": make_linear(c, 3 * c, bias=False),
            "sa_out": make_linear(c, c),
            "ln2": make_norm(c),
            "ca_q": make_linear(c, c, bias=False),
            "ca_k": make_linear(d_ctx, c, bias=False),
            "ca_v": make_linear(d_ctx, c, bias=False),
            "ca_out": make_linear(c, c),
            "ln3": make_norm(c),
            "geglu1": make_linear(c, 4 * c * 2),
            "geglu2": make_linear(4 * c, c),
            "conv_out": make_conv(c, c, 1)}


def make_unet(base, d_ctx):
    c1, c2, c3 = base, 2 * base, 4 * base
    h1, h2, h3 = c1 // 8, c2 // 8, c3 // 8
    n_time = 4 * base
    rb = lambda ci, co: make_res_block(ci, co, n_time)
    ab = lambda h: make_attn_block(8, h, d_ctx)
    enc = [
        [("conv", make_conv(4, c1, 3), 1)],
        [("res", rb(c1, c1)), ("attn", ab(h1))],
        [("res", rb(c1, c1)), ("attn", ab(h1))],
        [("conv", make_conv(c1, c1, 3), 2)],
        [("res", rb(c1, c2)), ("attn", ab(h2))],
        [("res", rb(c2, c2)), ("attn", ab(h2))],
        [("conv", make_conv(c2, c2, 3), 2)],
        [("res", rb(c2, c3)), ("attn", ab(h3))],
        [("res", rb(c3, c3)), ("attn", ab(h3))],
        [("conv", make_conv(c3, c3, 3), 2)],
        [("res", rb(c3, c3))],
        [("res", rb(c3, c3))],
    ]
    bott = [("res", rb(c3, c3)), ("attn", ab(h3)), ("res", rb(c3, c3))]
    dec = [
        [("res", rb(2 * c3, c3))],
        [("res", rb(2 * c3, c3))],
        [("res", rb(2 * c3, c3)), ("up", make_conv(c3, c3, 3))],
        [("res", rb(2 * c3, c3)), ("attn", ab(h3))],
        [("res", rb(2 * c3, c3)), ("attn", ab(h3))],
        [("res", rb(c3 + c2, c3)), ("attn", ab(h3)), ("up", make_conv(c3, c3, 3))],
        [("res", rb(c3 + c2, c2)), ("attn", ab(h2))],
        [("res", rb(2 * c2, c2)), ("attn", ab(h2))],
        [("res", rb(c2 + c1, c2)), ("attn", ab(h2)), ("up", make_conv(c2, c2, 3))],
        [("res", rb(c2 + c1, c1)), ("attn", ab(h1))],
        [("res", rb(2 * c1, c1)), ("attn", ab(h1))],
        [("res", rb(2 * c1, c1)), ("attn", ab(h1))],
    ]
    return {"enc": enc, "bott": bott, "dec": dec}


def make_output_layer(cin, cout):
    return {"gn": make_norm(cin), "conv": make_conv(cin, cout, 3)}


def make_diffusion(base=320, d_ctx=768):
    return {"time": make_time_embedding(base),
            "unet": make_unet(base, d_ctx),
            "final": make_output_layer(base, 4)}


# ----------------------------------------------------------------------------------
# Forward passes
# ----------------------------------------------------------------------------------
def time_embedding_fwd(p, t):
    x = linear(t, p["l1"]["w"], p["l1"]["b"], act="silu")
    return linear(x, p["l2"]["w"], p["l2"]["b"])


def res_block_fwd(p, feat, temb):
    N, H, W, _ = feat.shape
    h = group_norm(feat, p["gn1"]["g"], p["gn1"]["b"], eps=1e-5, silu_act=True)
    # time projection: fold the broadcast add into conv1's bias (exact)
    t = silu(temb)
    t = linear(t, p["lt"]["w"], p["lt"]["b"])            # (1, cout)
    bias1 = p["conv1"]["b"] + t.reshape(-1)
    h = conv2d(h, p["conv1"]["w"], bias1, ksize=3, pad=1)
    h = group_norm(h, p["gn2"]["g"], p["gn2"]["b"], eps=1e-5, silu_act=True)
    if "res" in p:
        res = conv2d(feat, p["res"]["w"], p["res"]["b"], ksize=1)
    else:
        res = feat
    # conv2 with the residual fused into the matmul epilogue
    return conv2d(h, p["conv2"]["w"], p["conv2"]["b"], ksize=3, pad=1, residual=res)


def _mh_split(t, N, S, n_head, dh):
    return t.reshape(N, S, n_head, dh).transpose(0, 2, 1, 3).reshape(N * n_head, S, dh)


def _mh_merge(t, N, S, n_head, dh):
    return t.reshape(N, n_head, S, dh).transpose(0, 2, 1, 3).reshape(N * S, n_head * dh)


def attn_block_fwd(p, x, ctx):
    n_head = p["n_head"]
    N, H, W, C = x.shape
    S = H * W
    dh = C // n_head
    res_long = x
    h = group_norm(x, p["gn"]["g"], p["gn"]["b"], eps=1e-6, silu_act=False)
    h = conv2d(h, p["conv_in"]["w"], p["conv_in"]["b"], ksize=1)
    tok = h.reshape(N * S, C)                            # tokens, channels last

    # self-attention (+ residual fused into the out-projection)
    hn = layer_norm(tok, p["ln1"]["g"], p["ln1"]["b"])
    qkv = linear(hn, p["sa_in"]["w"], None)
    q, k, v = jnp.split(qkv, 3, axis=-1)
    o = sdpa(_mh_split(q, N, S, n_head, dh),
             _mh_split(k, N, S, n_head, dh),
             _mh_split(v, N, S, n_head, dh))
    o = _mh_merge(o, N, S, n_head, dh)
    tok = linear(o, p["sa_out"]["w"], p["sa_out"]["b"], residual=tok)

    # cross-attention (+ fused residual)
    hn = layer_norm(tok, p["ln2"]["g"], p["ln2"]["b"])
    Sc, Dc = ctx.shape[1], ctx.shape[2]
    q = linear(hn, p["ca_q"]["w"], None)
    kc = linear(ctx.reshape(N * Sc, Dc), p["ca_k"]["w"], None)
    vc = linear(ctx.reshape(N * Sc, Dc), p["ca_v"]["w"], None)
    o = sdpa(_mh_split(q, N, S, n_head, dh),
             _mh_split(kc, N, Sc, n_head, dh),
             _mh_split(vc, N, Sc, n_head, dh))
    o = _mh_merge(o, N, S, n_head, dh)
    tok = linear(o, p["ca_out"]["w"], p["ca_out"]["b"], residual=tok)

    # GeGLU FFN (+ fused residual)
    hn = layer_norm(tok, p["ln3"]["g"], p["ln3"]["b"])
    g = linear(hn, p["geglu1"]["w"], p["geglu1"]["b"])
    a, gate = jnp.split(g, 2, axis=-1)
    hh = geglu(a, gate)
    tok = linear(hh, p["geglu2"]["w"], p["geglu2"]["b"], residual=tok)

    h = tok.reshape(N, H, W, C)
    # output 1x1 conv with the long residual fused in the epilogue
    return conv2d(h, p["conv_out"]["w"], p["conv_out"]["b"], ksize=1,
                  residual=res_long)


def upsample_fwd(p, x):
    x = jnp.repeat(jnp.repeat(x, 2, axis=1), 2, axis=2)   # nearest 2x (glue)
    return conv2d(x, p["w"], p["b"], ksize=3, pad=1)


def switch_seq_fwd(layers, x, ctx, temb):
    for entry in layers:
        kind = entry[0]
        if kind == "res":
            x = res_block_fwd(entry[1], x, temb)
        elif kind == "attn":
            x = attn_block_fwd(entry[1], x, ctx)
        elif kind == "up":
            x = upsample_fwd(entry[1], x)
        else:  # plain 3x3 conv (possibly strided)
            p, stride = entry[1], entry[2]
            x = conv2d(x, p["w"], p["b"], ksize=3, stride=stride, pad=1)
    return x


def unet_fwd(p, x, ctx, temb):
    skips = []
    for layers in p["enc"]:
        x = switch_seq_fwd(layers, x, ctx, temb)
        skips.append(x)
    x = switch_seq_fwd(p["bott"], x, ctx, temb)
    for layers in p["dec"]:
        x = jnp.concatenate([x, skips.pop()], axis=-1)    # torch.cat(dim=1) in NHWC
        x = switch_seq_fwd(layers, x, ctx, temb)
    return x


def output_layer_fwd(p, x):
    x = group_norm(x, p["gn"]["g"], p["gn"]["b"], eps=1e-5, silu_act=True)
    return conv2d(x, p["conv"]["w"], p["conv"]["b"], ksize=3, pad=1)


def diffusion_fwd(params, latent_nchw, context, time_vec):
    x = jnp.transpose(latent_nchw, (0, 2, 3, 1))          # NCHW -> NHWC
    temb = time_embedding_fwd(params["time"], time_vec)    # (1, 4*base)
    x = unet_fwd(params["unet"], x, context, temb)
    x = output_layer_fwd(params["final"], x)
    return jnp.transpose(x, (0, 3, 1, 2))                 # NHWC -> NCHW


# ----------------------------------------------------------------------------------
if __name__ == "__main__":
    # Width-scaled demo config so the full UNet graph compiles + runs well inside
    # the time budget (real SD uses base=320; the block graph / op sequence is
    # identical, only the channel widths scale).
    BASE = 32
    D_CTX = 768

    key = jax.random.PRNGKey(0)
    k1, k2, k3 = jax.random.split(key, 3)
    # Spatial must be divisible by 8 (three stride-2 downsamples): 8x8 latent.
    latent = jax.random.normal(k1, (1, 4, 8, 8), F32)      # NCHW, like PyTorch
    context = jax.random.normal(k2, (1, 8, D_CTX), F32)    # (batch, seq, d_context)
    time_vec = jax.random.normal(k3, (1, BASE), F32)       # (1, n_embd)

    params = make_diffusion(base=BASE, d_ctx=D_CTX)
    out = diffusion_fwd(params, latent, context, time_vec)
    out = jax.block_until_ready(out)

    assert out.shape == (1, 4, 8, 8), out.shape
    assert bool(jnp.all(jnp.isfinite(out)))
    print("KERNEL_OK")
</pallas_src>

<mosaic_0001>
module attributes {stable_mosaic.version = 11 : i64} {
  func.func @_matmul_kernel(%arg0: i32, %arg1: i32, %arg2: i32, %arg3: memref<8x256xbf16, #tpu.memory_space<vmem>>, %arg4: memref<256x256xbf16, #tpu.memory_space<vmem>>, %arg5: memref<1x256xf32, #tpu.memory_space<vmem>>, %arg6: memref<8x256xf32, #tpu.memory_space<vmem>>, %arg7: memref<8x256xf32, #tpu.memory_space<vmem>>) attributes {dimension_semantics = [#tpu.dimension_semantics<parallel>, #tpu.dimension_semantics<parallel>, #tpu.dimension_semantics<arbitrary>], iteration_bounds = array<i64: 1, 1, 1>, scalar_prefetch = 0 : i64, scratch_operands = 1 : i64, tpu.core_type = #tpu.core_type<tc>, window_params = [{transform_indices = @transform_0, window_bounds = array<i64: 8, 256>}, {transform_indices = @transform_1, window_bounds = array<i64: 256, 256>}, {transform_indices = @transform_2, window_bounds = array<i64: 1, 256>}, {transform_indices = @transform_3, window_bounds = array<i64: 8, 256>}]} {
    %c0_i32 = arith.constant 0 : i32
    %0 = arith.cmpi eq, %arg2, %c0_i32 : i32
    %1 = arith.extui %0 : i1 to i32
    %c0_i32_0 = arith.constant 0 : i32
    %2 = arith.cmpi ne, %1, %c0_i32_0 : i32
    scf.if %2 {
      %cst_10 = arith.constant 0.000000e+00 : f32
      %12 = vector.broadcast %cst_10 : f32 to vector<8x256xf32>
      %c0_11 = arith.constant 0 : index
      %c0_12 = arith.constant 0 : index
      %13 = vector.load %arg7[%c0_11, %c0_12] : memref<8x256xf32, #tpu.memory_space<vmem>>, vector<8x256xf32>
      tpu.vector_store %arg7[%c0_11, %c0_12], %12 {strides = array<i32>} : memref<8x256xf32, #tpu.memory_space<vmem>>, vector<8x256xf32>,
    } else {
    }
    %c0 = arith.constant 0 : index
    %c0_1 = arith.constant 0 : index
    %3 = vector.load %arg7[%c0, %c0_1] : memref<8x256xf32, #tpu.memory_space<vmem>>, vector<8x256xf32>
    %c0_2 = arith.constant 0 : index
    %c0_3 = arith.constant 0 : index
    %4 = vector.load %arg3[%c0_2, %c0_3] : memref<8x256xbf16, #tpu.memory_space<vmem>>, vector<8x256xbf16>
    %c0_4 = arith.constant 0 : index
    %c0_5 = arith.constant 0 : index
    %5 = vector.load %arg4[%c0_4, %c0_5] : memref<256x256xbf16, #tpu.memory_space<vmem>>, vector<256x256xbf16>
    %cst = arith.constant dense<0.000000e+00> : vector<8x256xf32>
    %6 = tpu.matmul %4, %5, %cst {dimension_numbers = #tpu.dot_dimension_numbers<[1], [0], [0], [1], [0, 0, 1, 1], [], []>} : vector<8x256xbf16>, vector<256x256xbf16>, vector<8x256xf32> -> vector<8x256xf32>
    %7 = arith.addf %3, %6 : vector<8x256xf32>
    %c0_6 = arith.constant 0 : index
    %c0_7 = arith.constant 0 : index
    %8 = vector.load %arg7[%c0_6, %c0_7] : memref<8x256xf32, #tpu.memory_space<vmem>>, vector<8x256xf32>
    tpu.vector_store %arg7[%c0_6, %c0_7], %7 {strides = array<i32>} : memref<8x256xf32, #tpu.memory_space<vmem>>, vector<8x256xf32>,
    %c0_i32_8 = arith.constant 0 : i32
    %9 = arith.cmpi eq, %arg2, %c0_i32_8 : i32
    %10 = arith.extui %9 : i1 to i32
    %c0_i32_9 = arith.constant 0 : i32
    %11 = arith.cmpi ne, %10, %c0_i32_9 : i32
    scf.if %11 {
      %c0_10 = arith.constant 0 : index
      %c0_11 = arith.constant 0 : index
      %12 = vector.load %arg7[%c0_10, %c0_11] : memref<8x256xf32, #tpu.memory_space<vmem>>, vector<8x256xf32>
      %c0_12 = arith.constant 0 : index
      %c0_13 = arith.constant 0 : index
      %13 = vector.load %arg5[%c0_12, %c0_13] : memref<1x256xf32, #tpu.memory_space<vmem>>, vector<1x256xf32>
      %14 = vector.broadcast %13 : vector<1x256xf32> to vector<8x256xf32>
      %15 = arith.addf %12, %14 : vector<8x256xf32>
      %cst_14 = arith.constant 0.000000e+00 : f32
      %16 = vector.broadcast %cst_14 : f32 to vector<8x256xf32>
      %17 = arith.subf %16, %15 : vector<8x256xf32>
      %18 = math.exp %17 : vector<8x256xf32>
      %cst_15 = arith.constant 1.000000e+00 : f32
      %19 = vector.broadcast %cst_15 : f32 to vector<8x256xf32>
      %20 = arith.addf %19, %18 : vector<8x256xf32>
      %cst_16 = arith.constant 1.000000e+00 : f32
      %21 = vector.broadcast %cst_16 : f32 to vector<8x256xf32>
      %22 = arith.divf %21, %20 : vector<8x256xf32>
      %23 = arith.mulf %15, %22 : vector<8x256xf32>
      %c0_17 = arith.constant 0 : index
      %c0_18 = arith.constant 0 : index
      %24 = vector.load %arg6[%c0_17, %c0_18] : memref<8x256xf32, #tpu.memory_space<vmem>>, vector<8x256xf32>
      tpu.vector_store %arg6[%c0_17, %c0_18], %23 {strides = array<i32>} : memref<8x256xf32, #tpu.memory_space<vmem>>, vector<8x256xf32>,
    } else {
    }
    return
  }
  func.func @transform_0(%arg0: i32, %arg1: i32, %arg2: i32) -> (i32, i32) {
    %c0_i32 = arith.constant 0 : i32
    return %arg0, %arg2 : i32, i32
  }
  func.func @transform_1(%arg0: i32, %arg1: i32, %arg2: i32) -> (i32, i32) {
    %c0_i32 = arith.constant 0 : i32
    return %arg2, %arg1 : i32, i32
  }
  func.func @transform_2(%arg0: i32, %arg1: i32, %arg2: i32) -> (i32, i32) {
    %c0_i32 = arith.constant 0 : i32
    %c0_i32_0 = arith.constant 0 : i32
    return %c0_i32, %arg1 : i32, i32
  }
  func.func @transform_3(%arg0: i32, %arg1: i32, %arg2: i32) -> (i32, i32) {
    %c0_i32 = arith.constant 0 : i32
    return %arg0, %arg1 : i32, i32
  }
}

</mosaic_0001>

<bundles_post_ra>
// kernel: tpu_custom_call.1
= control target key start
LH: loop header
LB: loop body
LE: loop exit
PB: predicated region body
PF: predicated region fallthrough
CT: control target
= control target key end

     0   :  { %8 = vsyncpa [#allocation4], 0  ;;  %s709_s0 = inlined_call_operand.hbm [shape: bf16[8,256], index: 0, kind: input, shape index: {}]   ;;  %s710_s1 = inlined_call_operand.hbm [shape: bf16[256,256], index: 1, kind: input, shape index: {}]   ;;  %s711_s2 = inlined_call_operand.hbm [shape: f32[1,256], index: 2, kind: input, shape index: {}]   ;;  %s712_s3 = inlined_call_operand.hbm [shape: f32[8,256], index: 3, kind: output, shape index: {}]  }
   0x1   :  { %9 = vsyncpa [#allocation7], 0  ;;  %s26_s14 = sshll.u32 %s710_s1, 4  ;;  %s27_s14 = int_to_ptr.hbm [resolvable:$true] %s26_s14 }
   0x2   :  { %10 = vsyncpa [#allocation5], 0  ;;  %s671_s15 = smov [#allocation6]   ;;  %s16_s19 = sshll.u32 %s709_s0, 4  ;;  %s17_s19 = int_to_ptr.hbm [resolvable:$true] %s16_s19 }
   0x3   :  { %s28_s16 = sshll.u32 %s671_s15, 4  ;;  %s672_s20 = smov 128   ;;  %s29_s16 = int_to_ptr.vmem [resolvable:$true] %s28_s16 }
   0x4   :  { %s673_s21 = smov 8   ;;  %s674_s22 = smov [#allocation3]  }
   0x5   :  { %34 = dma.hbm_to_vmem [thread:$0]  %s27_s14, 4096, %s29_s16, [#allocation7], %s672_s20, %s672_s20, %s673_s21  }
   0x6   :  { %s18_s23 = sshll.u32 %s674_s22, 4  ;;  %s40_s26 = sshll.u32 %s711_s2, 4  ;;  %s19_s23 = int_to_ptr.vmem [resolvable:$true] %s18_s23  ;;  %s41_s26 = int_to_ptr.hbm [resolvable:$true] %s40_s26 }
   0x7   :  { %21 = dma.hbm_to_vmem [thread:$0]  %s17_s19, 128, %s19_s23, [#allocation4]  }
   0x8   :  { %s675_s1 = smov [#allocation8]  }
   0x9   :  { %s42_s27 = sshll.u32 %s675_s1, 4  ;;  %s43_s27 = int_to_ptr.vmem [resolvable:$true] %s42_s27 }
   0xa   :  { %45 = dma.hbm_to_vmem [thread:$0]  %s41_s26, 32, %s43_s27, [#allocation7]  }
   0xb   :  { %665 = dma.done.wait [#allocation4], 128  }
   0xc   :  { %666 = vsyncadd [#allocation4], 4294967168 }
   0xd   :  { %667 = dma.done.wait [#allocation7], 4128  }
   0xe   :  { %668 = vsyncadd [#allocation7], 4294963168  ;;  %v453_v0 = vld [vmem:[#allocation6 + $0x70] sm:$0xf]  ;;  %v538_v1 = vld [vmem:[#allocation6 + $0x74] sm:$0xf0] }
   0xf   :  { %v517_v2 = vld [vmem:[#allocation6 + $0xf0] sm:$0xf]  ;;  %v454_v3 = vor.u32 %v538_v1, %v453_v0  ;;  %v554_v4 = vld [vmem:[#allocation6 + $0xf4] sm:$0xf0]  ;;  %v537_v5 = vld [vmem:[#allocation6 + $0x74] sm:$0xf] }
  0x10   :  { %v455_v6 = vld [vmem:[#allocation6 + $0x78] sm:$0xf0]  ;;  %v518_v7 = vor.u32 %v554_v4, %v517_v2  ;;  %v553_v9 = vld [vmem:[#allocation6 + $0xf4] sm:$0xf]  ;;  %v445_v11 = vld [vmem:[#allocation6 + $0x60] sm:$0xf] }
  0x11   :  { %v458_v8 = vor.u32 %v537_v5, %v455_v6  ;;  %v519_v10 = vld [vmem:[#allocation6 + $0xf8] sm:$0xf0]  ;;  %266 = vmatpush.bf16.msra.mxu0 %v454_v3  ;;  %v536_v13 = vld [vmem:[#allocation6 + $0x64] sm:$0xf0]  ;;  %v509_v14 = vld [vmem:[#allocation6 + $0xe0] sm:$0xf] }
  0x12   :  { %v522_v12 = vor.u32 %v553_v9, %v519_v10  ;;  %v552_v15 = vld [vmem:[#allocation6 + $0xe4] sm:$0xf0]  ;;  %279 = vmatpush.bf16.msra.mxu1 %v518_v7  ;;  %v446_v16 = vor.u32 %v536_v13, %v445_v11  ;;  %v535_v18 = vld [vmem:[#allocation6 + $0x64] sm:$0xf]  ;;  %v447_v19 = vld [vmem:[#allocation6 + $0x68] sm:$0xf0] }
  0x13   :  { %292 = vmatpush.bf16.msra.mxu2 %v458_v8  ;;  %v510_v17 = vor.u32 %v552_v15, %v509_v14  ;;  %v551_v20 = vld [vmem:[#allocation6 + $0xe4] sm:$0xf]  ;;  %v450_v21 = vor.u32 %v535_v18, %v447_v19  ;;  %v511_v22 = vld [vmem:[#allocation6 + $0xe8] sm:$0xf0]  ;;  %v437_v23 = vld [vmem:[#allocation6 + $0x50] sm:$0xf] }
  0x14   :  { %305 = vmatpush.bf16.msra.mxu3 %v522_v12  ;;  %v534_v24 = vld [vmem:[#allocation6 + $0x54] sm:$0xf0]  ;;  %v514_v25 = vor.u32 %v551_v20, %v511_v22  ;;  %v501_v26 = vld [vmem:[#allocation6 + $0xd0] sm:$0xf]  ;;  %v533_v28 = vld [vmem:[#allocation6 + $0x54] sm:$0xf] }
  0x15   :  { %v550_v27 = vld [vmem:[#allocation6 + $0xd4] sm:$0xf0]  ;;  %267 = vmatpush.bf16.msra.mxu0 %v446_v16  ;;  %v438_v29 = vor.u32 %v534_v24, %v437_v23  ;;  %v439_v30 = vld [vmem:[#allocation6 + $0x58] sm:$0xf0]  ;;  %v549_v31 = vld [vmem:[#allocation6 + $0xd4] sm:$0xf] }
  0x16   :  { %v503_v32 = vld [vmem:[#allocation6 + $0xd8] sm:$0xf0]  ;;  %280 = vmatpush.bf16.msra.mxu1 %v510_v17  ;;  %v502_v33 = vor.u32 %v550_v27, %v501_v26  ;;  %v442_v34 = vor.u32 %v533_v28, %v439_v30  ;;  %v429_v35 = vld [vmem:[#allocation6 + $0x40] sm:$0xf]  ;;  %v532_v36 = vld [vmem:[#allocation6 + $0x44] sm:$0xf0] }
  0x17   :  { %293 = vmatpush.bf16.msra.mxu2 %v450_v21  ;;  %v493_v37 = vld [vmem:[#allocation6 + $0xc0] sm:$0xf]  ;;  %v506_v38 = vor.u32 %v549_v31, %v503_v32  ;;  %v548_v39 = vld [vmem:[#allocation6 + $0xc4] sm:$0xf0]  ;;  %v531_v40 = vld [vmem:[#allocation6 + $0x44] sm:$0xf]  ;;  %v430_v44 = vor.u32 %v532_v36, %v429_v35 }
  0x18   :  { %306 = vmatpush.bf16.msra.mxu3 %v514_v25  ;;  %v431_v41 = vld [vmem:[#allocation6 + $0x48] sm:$0xf0]  ;;  %v547_v42 = vld [vmem:[#allocation6 + $0xc4] sm:$0xf]  ;;  %v494_v45 = vor.u32 %v548_v39, %v493_v37  ;;  %v421_v47 = vld [vmem:[#allocation6 + $0x30] sm:$0xf] }
  0x19   :  { %v495_v43 = vld [vmem:[#allocation6 + $0xc8] sm:$0xf0]  ;;  %268 = vmatpush.bf16.msra.mxu0 %v438_v29  ;;  %v434_v46 = vor.u32 %v531_v40, %v431_v41  ;;  %v530_v48 = vld [vmem:[#allocation6 + $0x34] sm:$0xf0]  ;;  %v485_v49 = vld [vmem:[#allocation6 + $0xb0] sm:$0xf] }
  0x1a   :  { %281 = vmatpush.bf16.msra.mxu1 %v502_v33  ;;  %v498_v50 = vor.u32 %v547_v42, %v495_v43  ;;  %v546_v51 = vld [vmem:[#allocation6 + $0xb4] sm:$0xf0]  ;;  %v529_v52 = vld [vmem:[#allocation6 + $0x34] sm:$0xf]  ;;  %v423_v53 = vld [vmem:[#allocation6 + $0x38] sm:$0xf0]  ;;  %v422_v56 = vor.u32 %v530_v48, %v421_v47 }
  0x1b   :  { %294 = vmatpush.bf16.msra.mxu2 %v442_v34  ;;  %v545_v54 = vld [vmem:[#allocation6 + $0xb4] sm:$0xf]  ;;  %v487_v55 = vld [vmem:[#allocation6 + $0xb8] sm:$0xf0]  ;;  %v486_v57 = vor.u32 %v546_v51, %v485_v49  ;;  %v426_v58 = vor.u32 %v529_v52, %v423_v53  ;;  %v413_v59 = vld [vmem:[#allocation6 + $0x20] sm:$0xf] }
  0x1c   :  { %307 = vmatpush.bf16.msra.mxu3 %v506_v38  ;;  %v528_v60 = vld [vmem:[#allocation6 + $0x24] sm:$0xf0]  ;;  %v477_v61 = vld [vmem:[#allocation6 + $0xa0] sm:$0xf]  ;;  %v490_v62 = vor.u32 %v545_v54, %v487_v55  ;;  %v527_v0 = vld [vmem:[#allocation6 + $0x24] sm:$0xf] }
  0x1d   :  { %269 = vmatpush.bf16.msra.mxu0 %v430_v44  ;;  %v544_v63 = vld [vmem:[#allocation6 + $0xa4] sm:$0xf0]  ;;  %v415_v1 = vld [vmem:[#allocation6 + $0x28] sm:$0xf0]  ;;  %v543_v2 = vld [vmem:[#allocation6 + $0xa4] sm:$0xf]  ;;  %v414_v4 = vor.u32 %v528_v60, %v413_v59 }
  0x1e   :  { %282 = vmatpush.bf16.msra.mxu1 %v494_v45  ;;  %v479_v3 = vld [vmem:[#allocation6 + $0xa8] sm:$0xf0]  ;;  %v478_v5 = vor.u32 %v544_v63, %v477_v61  ;;  %v418_v6 = vor.u32 %v527_v0, %v415_v1  ;;  %v405_v7 = vld [vmem:[#allocation6 + $0x10] sm:$0xf]  ;;  %v526_v8 = vld [vmem:[#allocation6 + $0x14] sm:$0xf0] }
  0x1f   :  { %295 = vmatpush.bf16.msra.mxu2 %v434_v46  ;;  %v469_v9 = vld [vmem:[#allocation6 + $0x90] sm:$0xf]  ;;  %v482_v10 = vor.u32 %v543_v2, %v479_v3  ;;  %v542_v11 = vld [vmem:[#allocation6 + $0x94] sm:$0xf0]  ;;  %v525_v12 = vld [vmem:[#allocation6 + $0x14] sm:$0xf]  ;;  %v406_v16 = vor.u32 %v526_v8, %v405_v7 }
  0x20   :  { %308 = vmatpush.bf16.msra.mxu3 %v498_v50  ;;  %v407_v13 = vld [vmem:[#allocation6 + $0x18] sm:$0xf0]  ;;  %v541_v14 = vld [vmem:[#allocation6 + $0x94] sm:$0xf]  ;;  %v470_v18 = vor.u32 %v542_v11, %v469_v9  ;;  %v397_v20 = vld [vmem:[#allocation6] sm:$0xf] }
  0x21   :  { %270 = vmatpush.bf16.msra.mxu0 %v422_v56  ;;  %v471_v15 = vld [vmem:[#allocation6 + $0x98] sm:$0xf0]  ;;  %v410_v19 = vor.u32 %v525_v12, %v407_v13  ;;  %v524_v21 = vld [vmem:[#allocation6 + $0x4] sm:$0xf0]  ;;  %v461_v22 = vld [vmem:[#allocation6 + $0x80] sm:$0xf] }
  0x22   :  { %283 = vmatpush.bf16.msra.mxu1 %v486_v57  ;;  %v66_v17 = vld [vmem:[#allocation3] sm:$0xff]  ;;  %v474_v23 = vor.u32 %v541_v14, %v471_v15  ;;  %v540_v24 = vld [vmem:[#allocation6 + $0x84] sm:$0xf0]  ;;  %v523_v25 = vld [vmem:[#allocation6 + $0x4] sm:$0xf]  ;;  %v398_v30 = vor.u32 %v524_v21, %v397_v20  ;;  %s676_s0 = smov [#allocation9]  }
  0x23   :  { %296 = vmatpush.bf16.msra.mxu2 %v426_v58  ;;  %v399_v26 = vld [vmem:[#allocation6 + $0x8] sm:$0xf0]  ;;  %v539_v27 = vld [vmem:[#allocation6 + $0x84] sm:$0xf]  ;;  %v100_v29 = vunpack.c.l.b16 %v66_v17  ;;  %v101_v31 = vunpack.c.h.b16 %v66_v17  ;;  %v462_v32 = vor.u32 %v540_v24, %v461_v22  ;;  %v327_v37 = vld [vmem:[#allocation8] sm:$0x3] }
  0x24   :  { %309 = vmatpush.bf16.msra.mxu3 %v490_v62  ;;  %v463_v28 = vld [vmem:[#allocation6 + $0x88] sm:$0xf0]  ;;  %v402_v33 = vor.u32 %v523_v25, %v399_v26  ;;  %v329_v39 = vperm.slane %v327_v37, 0  ;;  %v330_v45 = vperm.slane %v327_v37, 1  ;;  %s382_s2 = sshll.u32 %s676_s0, 4  ;;  %s384_s30 = sshll.u32 %s712_s3, 4  ;;  %s383_s2 = int_to_ptr.vmem [resolvable:$true] %s382_s2  ;;  %s385_s30 = int_to_ptr.hbm [resolvable:$true] %s384_s30 }
  0x25   :  { %271 = vmatpush.bf16.msra.mxu0 %v414_v4  ;;  %v466_v34 = vor.u32 %v539_v27, %v463_v28  ;;  %v102_v35 = vpack.c.b16 %v100_v29, %v100_v29  ;;  %v103_v36 = vpack.c.b16 %v101_v31, %v101_v31 }
  0x26   :  { %284 = vmatpush.bf16.msra.mxu1 %v478_v5 }
  0x27   :  { %297 = vmatpush.bf16.msra.mxu2 %v418_v6 }
  0x28   :  { %310 = vmatpush.bf16.msra.mxu3 %v482_v10 }
  0x29   :  { %272 = vmatpush.bf16.msra.mxu0 %v406_v16 }
  0x2a   :  { %285 = vmatpush.bf16.msra.mxu1 %v470_v18 }
  0x2b   :  { %298 = vmatpush.bf16.msra.mxu2 %v410_v19 }
  0x2c   :  { %311 = vmatpush.bf16.msra.mxu3 %v474_v23 }
  0x2d   :  { %273 = vmatpush.bf16.msra.mxu0 %v398_v30 }
  0x2e   :  { %286 = vmatpush.bf16.msra.mxu1 %v462_v32 }
  0x2f   :  { %299 = vmatpush.bf16.msra.mxu2 %v402_v33 }
  0x30   :  { %312 = vmatpush.bf16.msra.mxu3 %v466_v34  ;;  %274 = vmatmul.bf16.vlgmr.msra.gmra.mxu0 %v102_v35 }
  0x31   :  { %287 = vmatmul.bf16.vlgmr.msra.gmra.mxu1 %v103_v36 }
  0x32   :  { %300 = vmatmul.bf16.vlgmr.msra.gmra.mxu2 %v102_v35 }
  0x33   :  { %313 = vmatmul.bf16.vlgmr.msra.gmra.mxu3 %v103_v36 }
  0xad   :  { %v275_v38 = vpop.f32.mrf.mxu0 }
  0xae   :  { %v288_v40 = vpop.f32.mrf.mxu1 }
  0xaf   :  { %v289_v41 = vadd.f32 %v288_v40, %v275_v38 }
  0xb1   :  { %v333_v42 = vadd.f32 %v329_v39, %v289_v41 }
  0xb3   :  { %v335_v43 = vsub.f32 0.0, %v333_v42 }
  0xb5   :  { %v301_v44 = vpop.f32.mrf.mxu2  ;;  %v337_v46 = vmul.f32 1.442695, %v335_v43  ;;  %v277_v48 = vpop.f32.mrf.mxu0 }
  0xb6   :  { %v314_v47 = vpop.f32.mrf.mxu3  ;;  %v290_v50 = vpop.f32.mrf.mxu1 }
  0xb7   :  { %v315_v49 = vadd.f32 %v314_v47, %v301_v44  ;;  %561 = vpow2.f32 %v337_v46 }
  0xb9   :  { %v334_v51 = vadd.f32 %v330_v45, %v315_v49 }
  0xbb   :  { %v336_v52 = vsub.f32 0.0, %v334_v51 }
  0xbd   :  { %v339_v53 = vmul.f32 1.442695, %v336_v52  ;;  %v303_v54 = vpop.f32.mrf.mxu2  ;;  %v562_v55 = vpop.eup %561 }
  0xbe   :  { %v316_v56 = vpop.f32.mrf.mxu3  ;;  %v341_v57 = vadd.f32 1.0, %v562_v55 }
  0xbf   :  { %563 = vpow2.f32 %v339_v53 }
  0xc0   :  { %565 = vrcp.f32 %v341_v57  ;;  %v354_v63 = vand.u32 2147483648, %v341_v57  ;;  %vm348_vm0 = vweird.f32 %v341_v57  ;;  %v352_v1 = vand.u32 2147483647, %v341_v57 }
  0xc2   :  { %v355_v4 = vor.u32 1.1754944e-38, %v354_v63  ;;  %vm353_vm3 = vcmp.eq.f32.partialorder %v352_v1, 8.507059e+37 }
  0xc5   :  { %v564_v58 = vpop.eup %563 }
  0xc6   :  { %v342_v59 = vadd.f32 1.0, %v564_v58  ;;  %v566_v60 = vpop.eup %565 }
  0xc7   :  { %v344_v61 = vmul.f32 %v566_v60, %v341_v57  ;;  %vm349_vm1 = vweird.f32 %v566_v60 }
  0xc8   :  { %567 = vrcp.f32 %v342_v59  ;;  %vm350_vm2 = vmor %vm348_vm0, %vm349_vm1  ;;  %v369_v10 = vand.u32 2147483648, %v342_v59  ;;  %v367_v12 = vand.u32 2147483647, %v342_v59  ;;  %vm363_vm5 = vweird.f32 %v342_v59 }
  0xc9   :  { %v345_v62 = vsub.f32 1.0, %v344_v61 }
  0xca   :  { %v370_v14 = vor.u32 1.1754944e-38, %v369_v10  ;;  %vm368_vm7 = vcmp.eq.f32.partialorder %v367_v12, 8.507059e+37 }
  0xcb   :  { %v346_v0 = vmul.f32 %v566_v60, %v345_v62 }
  0xcd   :  { %v347_v3 = vadd.f32 %v566_v60, %v346_v0 }
  0xce   :  { %v568_v2 = vpop.eup %567 }
  0xcf   :  { %v359_v5 = vmul.f32 %v568_v2, %v342_v59  ;;  %v351_v6 = vsel %vm350_vm2, %v566_v60, %v347_v3  ;;  %vm364_vm4 = vweird.f32 %v568_v2 }
  0xd0   :  { %v356_v7 = vsel %vm353_vm3, %v355_v4, %v351_v6  ;;  %vm365_vm6 = vmor %vm363_vm5, %vm364_vm4 }
  0xd1   :  { %v360_v8 = vsub.f32 1.0, %v359_v5  ;;  %v373_v9 = vmul.f32 %v356_v7, %v333_v42 }
  0xd3   :  { %v361_v11 = vmul.f32 %v568_v2, %v360_v8  ;;  %375 = vst [vmem:[#allocation9] sm:$0xff] %v373_v9 }
  0xd5   :  { %v362_v13 = vadd.f32 %v568_v2, %v361_v11 }
  0xd7   :  { %v366_v15 = vsel %vm365_vm6, %v568_v2, %v362_v13 }
  0xd8   :  { %v371_v16 = vsel %vm368_vm7, %v370_v14, %v366_v15 }
  0xd9   :  { %v374_v17 = vmul.f32 %v371_v16, %v334_v51 }
  0xdb   :  { %376 = vst [vmem:[#allocation9 + $0x8] sm:$0xff] %v374_v17 }
  0xdc   :  { %387 = dma.vmem_to_hbm [thread:$0]  %s383_s2, 256, %s385_s30, [#allocation5]  }
  0xdd   :  { %669 = dma.done.wait [#allocation5], 256  }
  0xde   :  { %670 = vsyncadd [#allocation5], 4294967040 }
  0xdf   :  { %392 = vsyncpa [#allocation4], 1 }
  0xe0   :  { %393 = vsyncpa [#allocation7], 1 }
  0xe1   :  { %394 = vsyncpa [#allocation5], 1 }

</bundles_post_ra>
